<compile_context>
chip_gen: v7x
topology: tpu7x:2x2x1
jax: 0.10.0
libtpu: 0.0.40
codegen_flags: <defaults>
</compile_context>

<pallas_src>
import functools

import jax
import jax.numpy as jnp
from jax.experimental import pallas as pl
from jax.experimental.pallas import tpu as pltpu


def _gcnet_kernel(x_ref, cp_ref, vp_ref, o_ref, *, fusion_type, bt, out_dim):
    od = out_dim

    # Resident (grid-invariant) parameters, unpacked once per grid step.
    cp = cp_ref[...]                         # (C, 2*od + 2) f32
    vp = vp_ref[...]                         # (3, od)       f32
    w1t    = cp[:, 0:od]                     # (C, od)  channel_conv[0] weight^T
    w2     = cp[:, od:2 * od]                # (C, od)  channel_conv[3] weight
    wm_col = cp[:, 2 * od:2 * od + 1]        # (C, 1)   conv_mask weight
    b2     = cp[:, 2 * od + 1:2 * od + 2]    # (C, 1)   channel_conv[3] bias
    b1 = vp[0:1, :]                          # (1, od)  channel_conv[0] bias
    g  = vp[1:2, :]                          # (1, od)  LayerNorm gamma
    be = vp[2:3, :]                          # (1, od)  LayerNorm beta

    def body(bi, carry):
        xb = x_ref[bi]                       # (C, HW), native dtype (no f32 slab)

        # conv_mask: 1x1 conv C -> 1 on the VPU/XLU (multiply + sublane reduce).
        # conv_mask bias dropped: softmax over HW is shift invariant.
        logits = jnp.sum(xb * wm_col, axis=0, keepdims=True)        # (1, HW) f32

        # softmax over the flattened spatial axis (torch Softmax(dim=2)).
        m = jnp.max(logits, axis=-1, keepdims=True)
        e = jnp.exp(logits - m)
        inv = pl.reciprocal(jnp.sum(e, axis=-1, keepdims=True), approx=True)
        p = e * inv                                                  # (1, HW)

        # context pooling on the VPU/XLU: (C,HW)*(1,HW) lane-reduce -> (C,1).
        context = jnp.sum(xb * p, axis=-1, keepdims=True)            # (C, 1) f32

        # channel_conv[0]: 1x1 conv C -> out_dim (tiny, VPU).
        t = jnp.sum(w1t * context, axis=0, keepdims=True) + b1       # (1, od)
        # channel_conv[1]: LayerNorm over [out_dim, 1, 1] (eps = 1e-5).
        mu = jnp.mean(t, axis=-1, keepdims=True)
        var = jnp.mean((t - mu) * (t - mu), axis=-1, keepdims=True)
        tn = (t - mu) * jax.lax.rsqrt(var + 1e-5) * g + be
        # channel_conv[2]: ReLU.
        tr = jnp.maximum(tn, 0.0)
        # channel_conv[3]: 1x1 conv out_dim -> C (tiny, VPU).
        ctx2 = jnp.sum(w2 * tr, axis=1, keepdims=True) + b2          # (C, 1)

        if fusion_type == 'add':
            y = xb + ctx2                        # broadcast (C,1) over (C,HW)
        else:                                    # 'mul'
            y = xb * jax.nn.sigmoid(ctx2)
        o_ref[bi] = y.astype(o_ref.dtype)
        return carry

    # fori_loop bounds live ranges (vs. a static Python unroll); unroll small
    # trip counts so the LLO scheduler keeps full visibility.
    jax.lax.fori_loop(0, bt, body, None, unroll=bool(bt <= 8))


def _pick_batch_tile(batch, per_batch_bytes, target_bytes=6 << 20):
    """Largest divisor of `batch` whose tile stays under ~6 MiB.

    Keeps at least two grid steps whenever batch >= 2 so the 'parallel' batch
    axis can be sharded across both TensorCores on v7x (no-op on v5e/v6e).
    """
    max_bt = batch if batch < 2 else batch // 2
    bt = 1
    for d in range(1, max_bt + 1):
        if batch % d == 0 and d * per_batch_bytes <= target_bytes:
            bt = d
    return bt


def gcnet_atten_pallas(x, params, fusion_type='add'):
    assert fusion_type in ('add', 'mul')
    B, C, H, W = x.shape
    HW = H * W
    out_dim = params['w1'].shape[0]
    f32 = jnp.float32

    # No wrapper pad/slice: the block's last two dims equal the full array
    # dims, so unaligned HW is handled by masked vector stores in-kernel.
    x3 = x.reshape(B, C, HW)                  # native dtype end-to-end

    # Pack the tiny channel-path parameters into two lane-dense buffers.
    wm  = params['wm'].reshape(C, 1).astype(f32)                 # conv_mask weight
    w1t = params['w1'].reshape(out_dim, C).T.astype(f32)         # (C, out_dim)
    w2  = params['w2'].reshape(C, out_dim).astype(f32)           # (C, out_dim)
    b2  = params['b2'].reshape(C, 1).astype(f32)                 # (C, 1)
    cparams = jnp.concatenate([w1t, w2, wm, b2], axis=1)         # (C, 2*od + 2)
    vparams = jnp.stack([params['b1'].reshape(out_dim),
                         params['ln_g'].reshape(out_dim),
                         params['ln_b'].reshape(out_dim)], axis=0).astype(f32)
    # conv_mask bias intentionally NOT passed: softmax is shift invariant.

    per_batch_bytes = C * HW * x3.dtype.itemsize
    bt = _pick_batch_tile(B, per_batch_bytes)
    tile_bytes = bt * per_batch_bytes
    temp_bytes = 2 * C * HW * 4               # transient f32 products in the body
    # in + out double-buffered + f32 temporaries + headroom; capped at 48 MiB
    # so it fits inside v7x's 64 MiB physical VMEM (v5e/v6e have 128 MiB).
    vmem_limit = int(min(max(4 * tile_bytes + temp_bytes + (4 << 20), 16 << 20),
                         48 << 20))
    # TODO(synk): for feature maps where a single (C, HW) slice plus the f32
    # temporaries exceed the 48 MiB budget (notably on v7x), an HW-tiled
    # two-pass / online-softmax variant is needed instead of whole-map blocks.

    kernel = functools.partial(_gcnet_kernel, fusion_type=fusion_type,
                               bt=bt, out_dim=out_dim)

    out3 = pl.pallas_call(
        kernel,
        out_shape=jax.ShapeDtypeStruct((B, C, HW), x3.dtype),
        grid_spec=pltpu.PrefetchScalarGridSpec(
            num_scalar_prefetch=0,
            grid=(B // bt,),
            in_specs=[
                pl.BlockSpec((bt, C, HW), lambda b: (b, 0, 0)),        # X tile
                pl.BlockSpec((C, 2 * out_dim + 2), lambda b: (0, 0)),  # packed (C,*)
                pl.BlockSpec((3, out_dim), lambda b: (0, 0)),          # packed (1,od)
            ],
            out_specs=pl.BlockSpec((bt, C, HW), lambda b: (b, 0, 0)),
        ),
        compiler_params=pltpu.CompilerParams(
            dimension_semantics=("parallel",),     # batch steps independent
            vmem_limit_bytes=vmem_limit),
    )(x3, cparams, vparams)

    return out3.reshape(B, C, H, W)


def gcnet_atten_ref(x, params, fusion_type='add'):
    """Pure-JAX reference mirroring the PyTorch forward (incl. conv_mask bias)."""
    B, C, H, W = x.shape
    HW = H * W
    out_dim = params['w1'].shape[0]
    hp = jax.lax.Precision.HIGHEST
    xf = x.reshape(B, C, HW).astype(jnp.float32)
    logits = jnp.einsum('c,bcs->bs', params['wm'].reshape(C), xf,
                        precision=hp) + params['bm'].reshape(())
    p = jax.nn.softmax(logits, axis=-1)                                 # (B, HW)
    context = jnp.einsum('bcs,bs->bc', xf, p, precision=hp)             # (B, C)
    t = jnp.einsum('bc,oc->bo', context, params['w1'].reshape(out_dim, C),
                   precision=hp) + params['b1'].reshape(out_dim)
    mu = t.mean(-1, keepdims=True)
    var = ((t - mu) ** 2).mean(-1, keepdims=True)
    tn = (t - mu) / jnp.sqrt(var + 1e-5) * params['ln_g'].reshape(out_dim) \
        + params['ln_b'].reshape(out_dim)
    tr = jnp.maximum(tn, 0.0)
    ctx2 = jnp.einsum('bo,co->bc', tr, params['w2'].reshape(C, out_dim),
                      precision=hp) + params['b2'].reshape(C)
    ctx2 = ctx2[:, :, None, None]
    if fusion_type == 'add':
        return (x.astype(jnp.float32) + ctx2).astype(x.dtype)
    return (x.astype(jnp.float32) * jax.nn.sigmoid(ctx2)).astype(x.dtype)


if __name__ == "__main__":
    def make_params(key, C, out_dim):
        ks = jax.random.split(key, 8)
        # NOTE: the real reset_parameters() zero-inits the last conv (which would
        # make the output identically X); use small random values instead so the
        # whole kernel path is exercised end-to-end.
        return {
            'wm':   jax.random.normal(ks[0], (1, C, 1, 1), jnp.float32) * 0.2,
            'bm':   jax.random.normal(ks[1], (1,), jnp.float32) * 0.1,
            'w1':   jax.random.normal(ks[2], (out_dim, C, 1, 1), jnp.float32) * 0.2,
            'b1':   jax.random.normal(ks[3], (out_dim,), jnp.float32) * 0.1,
            'ln_g': 1.0 + 0.1 * jax.random.normal(ks[4], (out_dim, 1, 1), jnp.float32),
            'ln_b': 0.1 * jax.random.normal(ks[5], (out_dim, 1, 1), jnp.float32),
            'w2':   jax.random.normal(ks[6], (C, out_dim, 1, 1), jnp.float32) * 0.2,
            'b2':   jax.random.normal(ks[7], (C,), jnp.float32) * 0.1,
        }

    key = jax.random.PRNGKey(0)
    k_param, k_x1, k_x2 = jax.random.split(key, 3)

    B, C, reduction = 2, 8, 4
    out_dim = C // reduction if C >= reduction else 1        # -> 2
    params = make_params(k_param, C, out_dim)

    # Tolerance note: the kernel uses the EUP approximate reciprocal for the
    # softmax normalization; all other math is exact f32 on the VPU.
    TOL = 2e-3

    # Case 1: 'add' fusion, HW = 256 (lane-aligned).
    x1 = jax.random.normal(k_x1, (B, C, 16, 16), jnp.float32)
    y1 = jax.block_until_ready(gcnet_atten_pallas(x1, params, 'add'))
    r1 = gcnet_atten_ref(x1, params, 'add')
    assert y1.shape == x1.shape
    assert jnp.allclose(y1, r1, atol=TOL, rtol=TOL), "add-fusion mismatch"

    # Case 2: 'mul' fusion, HW = 144 (unaligned; exercises full-HW blocks with
    # masked stores instead of a wrapper pad/slice).
    x2 = jax.random.normal(k_x2, (B, C, 12, 12), jnp.float32)
    y2 = jax.block_until_ready(gcnet_atten_pallas(x2, params, 'mul'))
    r2 = gcnet_atten_ref(x2, params, 'mul')
    assert y2.shape == x2.shape
    assert jnp.allclose(y2, r2, atol=TOL, rtol=TOL), "mul-fusion mismatch"

    print("KERNEL_OK")
</pallas_src>

<mosaic_0001>
module attributes {stable_mosaic.version = 11 : i64} {
  func.func @_gcnet_kernel(%arg0: i32, %arg1: memref<1x8x256xf32, #tpu.memory_space<vmem>>, %arg2: memref<8x6xf32, #tpu.memory_space<vmem>>, %arg3: memref<3x2xf32, #tpu.memory_space<vmem>>, %arg4: memref<1x8x256xf32, #tpu.memory_space<vmem>>) attributes {dimension_semantics = [#tpu.dimension_semantics<parallel>], iteration_bounds = array<i64: 2>, scalar_prefetch = 0 : i64, scratch_operands = 0 : i64, tpu.core_type = #tpu.core_type<tc>, window_params = [{transform_indices = @transform_0, window_bounds = array<i64: 1, 8, 256>}, {pipeline_mode = #tpu.pipeline_mode<synchronous>, transform_indices = @transform_1, window_bounds = array<i64: 8, 6>}, {pipeline_mode = #tpu.pipeline_mode<synchronous>, transform_indices = @transform_2, window_bounds = array<i64: 3, 2>}, {transform_indices = @transform_3, window_bounds = array<i64: 1, 8, 256>}]} {
    %c0 = arith.constant 0 : index
    %c0_0 = arith.constant 0 : index
    %0 = vector.load %arg2[%c0, %c0_0] : memref<8x6xf32, #tpu.memory_space<vmem>>, vector<8x6xf32>
    %c0_1 = arith.constant 0 : index
    %c0_2 = arith.constant 0 : index
    %1 = vector.load %arg3[%c0_1, %c0_2] : memref<3x2xf32, #tpu.memory_space<vmem>>, vector<3x2xf32>
    %2 = vector.extract_strided_slice %0 {offsets = [0, 0], sizes = [8, 2], strides = [1, 1]} : vector<8x6xf32> to vector<8x2xf32>
    %3 = vector.extract_strided_slice %0 {offsets = [0, 2], sizes = [8, 2], strides = [1, 1]} : vector<8x6xf32> to vector<8x2xf32>
    %4 = vector.extract_strided_slice %0 {offsets = [0, 4], sizes = [8, 1], strides = [1, 1]} : vector<8x6xf32> to vector<8x1xf32>
    %5 = vector.extract_strided_slice %0 {offsets = [0, 5], sizes = [8, 1], strides = [1, 1]} : vector<8x6xf32> to vector<8x1xf32>
    %6 = vector.extract_strided_slice %1 {offsets = [0, 0], sizes = [1, 2], strides = [1, 1]} : vector<3x2xf32> to vector<1x2xf32>
    %7 = vector.extract_strided_slice %1 {offsets = [1, 0], sizes = [1, 2], strides = [1, 1]} : vector<3x2xf32> to vector<1x2xf32>
    %8 = vector.extract_strided_slice %1 {offsets = [2, 0], sizes = [1, 2], strides = [1, 1]} : vector<3x2xf32> to vector<1x2xf32>
    %c0_i32 = arith.constant 0 : i32
    %9 = arith.index_cast %c0_i32 : i32 to index
    %c0_3 = arith.constant 0 : index
    %c0_4 = arith.constant 0 : index
    %10 = vector.load %arg1[%9, %c0_3, %c0_4] : memref<1x8x256xf32, #tpu.memory_space<vmem>>, vector<1x8x256xf32>
    %11 = vector.shape_cast %10 : vector<1x8x256xf32> to vector<8x256xf32>
    %12 = vector.broadcast %4 : vector<8x1xf32> to vector<8x256xf32>
    %13 = arith.mulf %11, %12 : vector<8x256xf32>
    %cst = arith.constant dense<0.000000e+00> : vector<256xf32>
    %14 = vector.multi_reduction <add>, %13, %cst [0] : vector<8x256xf32> to vector<256xf32>
    %15 = vector.shape_cast %14 : vector<256xf32> to vector<1x256xf32>
    %cst_5 = arith.constant dense<0xFF800000> : vector<1xf32>
    %16 = vector.multi_reduction <maximumf>, %15, %cst_5 [1] : vector<1x256xf32> to vector<1xf32>
    %17 = vector.shape_cast %16 : vector<1xf32> to vector<1x1xf32>
    %18 = vector.broadcast %17 : vector<1x1xf32> to vector<1x256xf32>
    %19 = arith.subf %15, %18 : vector<1x256xf32>
    %20 = math.exp %19 : vector<1x256xf32>
    %cst_6 = arith.constant dense<0.000000e+00> : vector<1xf32>
    %21 = vector.multi_reduction <add>, %20, %cst_6 [1] : vector<1x256xf32> to vector<1xf32>
    %22 = vector.shape_cast %21 : vector<1xf32> to vector<1x1xf32>
    %23 = tpu.reciprocal %22 {approx = true} : vector<1x1xf32> -> vector<1x1xf32>
    %24 = vector.broadcast %23 : vector<1x1xf32> to vector<1x256xf32>
    %25 = arith.mulf %20, %24 : vector<1x256xf32>
    %26 = vector.broadcast %25 : vector<1x256xf32> to vector<8x256xf32>
    %27 = arith.mulf %11, %26 : vector<8x256xf32>
    %cst_7 = arith.constant dense<0.000000e+00> : vector<8xf32>
    %28 = vector.multi_reduction <add>, %27, %cst_7 [1] : vector<8x256xf32> to vector<8xf32>
    %29 = vector.shape_cast %28 : vector<8xf32> to vector<8x1xf32>
    %30 = vector.broadcast %29 : vector<8x1xf32> to vector<8x2xf32>
    %31 = arith.mulf %2, %30 : vector<8x2xf32>
    %cst_8 = arith.constant dense<0.000000e+00> : vector<2xf32>
    %32 = vector.multi_reduction <add>, %31, %cst_8 [0] : vector<8x2xf32> to vector<2xf32>
    %33 = vector.shape_cast %32 : vector<2xf32> to vector<1x2xf32>
    %34 = arith.addf %33, %6 : vector<1x2xf32>
    %cst_9 = arith.constant dense<0.000000e+00> : vector<1xf32>
    %35 = vector.multi_reduction <add>, %34, %cst_9 [1] : vector<1x2xf32> to vector<1xf32>
    %36 = vector.shape_cast %35 : vector<1xf32> to vector<1x1xf32>
    %cst_10 = arith.constant 2.000000e+00 : f32
    %37 = vector.broadcast %cst_10 : f32 to vector<1x1xf32>
    %38 = arith.divf %36, %37 : vector<1x1xf32>
    %39 = vector.broadcast %38 : vector<1x1xf32> to vector<1x2xf32>
    %40 = arith.subf %34, %39 : vector<1x2xf32>
    %41 = vector.broadcast %38 : vector<1x1xf32> to vector<1x2xf32>
    %42 = arith.subf %34, %41 : vector<1x2xf32>
    %43 = arith.mulf %40, %42 : vector<1x2xf32>
    %cst_11 = arith.constant dense<0.000000e+00> : vector<1xf32>
    %44 = vector.multi_reduction <add>, %43, %cst_11 [1] : vector<1x2xf32> to vector<1xf32>
    %45 = vector.shape_cast %44 : vector<1xf32> to vector<1x1xf32>
    %cst_12 = arith.constant 2.000000e+00 : f32
    %46 = vector.broadcast %cst_12 : f32 to vector<1x1xf32>
    %47 = arith.divf %45, %46 : vector<1x1xf32>
    %48 = vector.broadcast %38 : vector<1x1xf32> to vector<1x2xf32>
    %49 = arith.subf %34, %48 : vector<1x2xf32>
    %cst_13 = arith.constant 9.99999974E-6 : f32
    %50 = vector.broadcast %cst_13 : f32 to vector<1x1xf32>
    %51 = arith.addf %47, %50 : vector<1x1xf32>
    %52 = math.rsqrt %51 : vector<1x1xf32>
    %53 = vector.broadcast %52 : vector<1x1xf32> to vector<1x2xf32>
    %54 = arith.mulf %49, %53 : vector<1x2xf32>
    %55 = arith.mulf %54, %7 : vector<1x2xf32>
    %56 = arith.addf %55, %8 : vector<1x2xf32>
    %cst_14 = arith.constant 0.000000e+00 : f32
    %57 = vector.broadcast %cst_14 : f32 to vector<1x2xf32>
    %58 = arith.maximumf %56, %57 : vector<1x2xf32>
    %59 = vector.broadcast %58 : vector<1x2xf32> to vector<8x2xf32>
    %60 = arith.mulf %3, %59 : vector<8x2xf32>
    %cst_15 = arith.constant dense<0.000000e+00> : vector<8xf32>
    %61 = vector.multi_reduction <add>, %60, %cst_15 [1] : vector<8x2xf32> to vector<8xf32>
    %62 = vector.shape_cast %61 : vector<8xf32> to vector<8x1xf32>
    %63 = arith.addf %62, %5 : vector<8x1xf32>
    %64 = vector.broadcast %63 : vector<8x1xf32> to vector<8x256xf32>
    %65 = arith.addf %11, %64 : vector<8x256xf32>
    %66 = arith.index_cast %c0_i32 : i32 to index
    %c0_16 = arith.constant 0 : index
    %c0_17 = arith.constant 0 : index
    %67 = vector.load %arg4[%66, %c0_16, %c0_17] : memref<1x8x256xf32, #tpu.memory_space<vmem>>, vector<1x8x256xf32>
    %68 = vector.shape_cast %67 : vector<1x8x256xf32> to vector<8x256xf32>
    %69 = vector.shape_cast %65 : vector<8x256xf32> to vector<1x8x256xf32>
    tpu.vector_store %arg4[%66, %c0_16, %c0_17], %69 {strides = array<i32>} : memref<1x8x256xf32, #tpu.memory_space<vmem>>, vector<1x8x256xf32>,
    %c1_i32 = arith.constant 1 : i32
    return
  }
  func.func @transform_0(%arg0: i32) -> (i32, i32, i32) {
    %c0_i32 = arith.constant 0 : i32
    %c0_i32_0 = arith.constant 0 : i32
    %c0_i32_1 = arith.constant 0 : i32
    return %arg0, %c0_i32, %c0_i32_0 : i32, i32, i32
  }
  func.func @transform_1(%arg0: i32) -> (i32, i32) {
    %c0_i32 = arith.constant 0 : i32
    %c0_i32_0 = arith.constant 0 : i32
    %c0_i32_1 = arith.constant 0 : i32
    return %c0_i32, %c0_i32_0 : i32, i32
  }
  func.func @transform_2(%arg0: i32) -> (i32, i32) {
    %c0_i32 = arith.constant 0 : i32
    %c0_i32_0 = arith.constant 0 : i32
    %c0_i32_1 = arith.constant 0 : i32
    return %c0_i32, %c0_i32_0 : i32, i32
  }
  func.func @transform_3(%arg0: i32) -> (i32, i32, i32) {
    %c0_i32 = arith.constant 0 : i32
    %c0_i32_0 = arith.constant 0 : i32
    %c0_i32_1 = arith.constant 0 : i32
    return %arg0, %c0_i32, %c0_i32_0 : i32, i32, i32
  }
}

</mosaic_0001>

<bundles_post_ra>
// kernel: tpu_custom_call.1
= control target key start
LH: loop header
LB: loop body
LE: loop exit
PB: predicated region body
PF: predicated region fallthrough
CT: control target
= control target key end

     0   :  { %8 = vsyncpa [#allocation3], 0  ;;  %s764_s0 = inlined_call_operand.hbm [shape: f32[2,8,256], index: 0, kind: input, shape index: {}]   ;;  %s765_s1 = inlined_call_operand.vmem [shape: f32[8,6], index: 1, kind: input, shape index: {}]   ;;  %s766_s2 = inlined_call_operand.vmem [shape: f32[3,2], index: 2, kind: input, shape index: {}]   ;;  %s767_s3 = inlined_call_operand.hbm [shape: f32[2,8,256], index: 3, kind: output, shape index: {}]  }
   0x1   :  { %10 = vsyncpa [#allocation3 + $0x1], 0 }
   0x2   :  { %11 = vsyncpa [#allocation4], 0 }
   0x3   :  { %13 = vsyncpa [#allocation4 + $0x1], 0  ;;  %s575_s12 = smov 0   ;;  %s577_s13 = smov 0  }
   0x4   :  { %s579_s14 = smov 0   ;;  %s581_s15 = smov 0  }
   0x5 LB: > { %s596_s16 = sadd.s32 4294967295, %s547_s15   ;;  %s374_s17 = sadd.s32 4294967294, %s547_s15   ;;  %s547_s15 = sphi %s581_s15, %s782_s15   ;;  %s543_s14 = sphi %s579_s14, %s781_s14   ;;  %s539_s13 = sphi %s577_s13, %s780_s13   ;;  %s535_s12 = sphi %s575_s12, %s779_s12  }
   0x6   : > { %s600_s18 = sadd.s32 1, %s547_s15   ;;  %s26_s19 = sadd.s32 1, %s543_s14 }
   0x7   : > { %s23_s20 = ssub.s32 %s547_s15, %s600_s18  ;;  %p33_p0 = scmp.ne.s32.totalorder %s543_s14, %s539_s13 }
   0x8   : > { %p24_p1 = scmp.eq.s32.totalorder %s23_s20, 0  ;;  %p34_p2 = scmp.eq.s32.totalorder %s547_s15, 0 }
   0x9   : > { %p39_p3 = scmp.ne.s32.totalorder %s539_s13, %s535_s12  ;;  %p40_p4 = scmp.eq.s32.totalorder %s596_s16, 0 }
   0xa   : > { %s612_s21 = scalar_select %p24_p1, %s543_s14, %s26_s19  }
   0xb   : > { %p614_p5 = por %p34_p2, %p33_p0  ;;  %p618_p6 = por %p40_p4, %p39_p3 }
   0xc   : > { %p105_p7 = scmp.eq.s32.totalorder %s596_s16, 1  ;;  %p111_p8 = scmp.eq.s32.totalorder %s374_s17, 1 }
   0xd   : > { %p402_p10 = scmp.lt.s32.totalorder %s547_s15, 2  ;;  %s137_s26 = sand.u32 1, %s543_s14  }
   0xe   : > { %p625_p11 = por %p105_p7, %p33_p0  ;;  %p629_p12 = por %p111_p8, %p39_p3 }
   0xf   : > { %s388_s27 = sshll.u32 %s547_s15, 8  ;;  %s377_s28 = sshll.u32 %s137_s26, 4 }
  0x10   : > { %s771_s24 = scalar_select %p625_p11, 1, 0 }
  0x11   : > { %s772_s25 = scalar_select %p629_p12, 1, 0 }
  0x12   : > { %s638_s4 = scalar_lea.hbm %s764_s0, %s388_s27  ;;  %s141_s5 = scalar_lea.vmem [#allocation2], %s377_s28 }
  0x13   : > { %s149_s6 = sshll.u32 %s141_s5, 4  ;;  %p642_p13 = pnand %p402_p10, %p614_p5  ;;  %s646_s6 = int_to_ptr.vmem [resolvable:$true] %s149_s6 }
  0x14   : > { %s138_s8 = scalar_lea.sflag [#allocation3], %s137_s26  ;;  %s451_s9 = scalar_lea.hbm %s638_s4, 256 }
  0x15   : > { %p452_p2 = scmp.ne.s32.totalorder %s638_s4, %s451_s9  ;;  %p453_p3 = pneg %p642_p13 }
  0x16   : > { %s456_s17 = scalar_lea.hbm %s764_s0, 512  ;;  %p457_p5 = scmp.lt.u32.totalorder %s638_s4, %s764_s0 }
  0x17   : > { %p454_p4 = pnand %p453_p3, %p452_p2  ;;  %p458_p8 = scmp.lt.u32.totalorder %s456_s17, %s451_s9 }
  0x18   : > { %p460_p9 = scmp.lt.u32.totalorder %s451_s9, %s638_s4 }
  0x19   : > { %p455_p7 = pneg %p454_p4  ;;  %p459_p10 = por %p458_p8, %p457_p5 }
  0x1b   : > { %p461_p0 = por %p460_p9, %p459_p10 }
  0x1d   : > { %p462_p1 = pnand %p461_p0, %p455_p7 }
  0x1f   : > { %465 = shalt.err (!%p462_p1)
}
  0x20   : > { %s466_s22 = scalar_lea.vmem %s646_s6, 256  ;;  %s549_s26 = smov [#allocation2]  }
  0x21   : > { %p467_p2 = scmp.ne.s32.totalorder %s646_s6, %s466_s22  ;;  %s471_s27 = sshll.u32 %s549_s26, 4  ;;  %s472_s27 = int_to_ptr.vmem [resolvable:$false] %s471_s27 }
  0x22   : > { %s473_s28 = scalar_lea.vmem %s472_s27, 512  ;;  %p474_p11 = scmp.lt.s32.totalorder %s646_s6, %s472_s27 }
  0x23   : > { %p469_p4 = pnand %p467_p2, %p453_p3  ;;  %p475_p5 = scmp.lt.s32.totalorder %s473_s28, %s466_s22 }
  0x25   : > { %p470_p12 = pneg %p469_p4  ;;  %p476_p8 = por %p475_p5, %p474_p11 }
  0x27   : > { %p477_p9 = pnand %p476_p8, %p470_p12 }
  0x29   : > { %480 = shalt.err (!%p477_p9)
}
  0x2a   : > { %397 = dma.hbm_to_vmem [thread:$0]  (!%p642_p13), %s638_s4, 256, %s646_s6, %s138_s8  }
  0x2b   : > { %p774_p0 = scmp.lt.s32.totalorder %s547_s15, 3  ;;  %p775_p1 = scmp.ge.s32.totalorder %s547_s15, 1 }
  0x2d   : > { %p155_p3 = pnand %p775_p1, %p774_p0 }
  0x2e   : > { %s680_s29 = sand.u32 (!%p155_p3), 1, %s539_s13  }
  0x2f   : > { %158 = sbr.rel (%p155_p3) target bundleno = 1517 (0x5ed), region = 32  ;;  %s381_s30 = sshll.u32 (!%p155_p3), %s680_s29, 4 }
  0x30   : > { %s161_s5 = scalar_lea.sflag (!%p155_p3), [#allocation3], %s680_s29  ;;  %s164_s7 = scalar_lea.vmem (!%p155_p3), [#allocation2], %s381_s30 }
  0x36   : > { %526 = dma.done.wait (%p618_p6), %s161_s5, 256  }
  0x37   : > { %528 = vsyncadd (%p618_p6), %s161_s5, 4294967040  ;;  %v550_v0 = vmov 4   ;;  %v693_v1 = vld [vmem:[%s765_s1] sm:$0xff]  ;;  %v698_v3 = vld [vmem:[%s164_s7 + $0x8] sm:$0xff]  ;;  %vm231_vm0 = vcmask 15360   ;;  %vm240_vm1 = vcmask 8192   ;;  %v263_v55 = vlaneseq }
  0x38   : > { %440 = vset.pattern.permute.xlu0 %v550_v0  ;;  %v696_v2 = vld [vmem:[%s164_s7] sm:$0xff]  ;;  %s551_s9 = smov 2   ;;  %s552_s10 = smov 126  }
  0x39   : > { %193 = vperm.xlu0 %440, %v693_v1   ;;  %v188_v43 = vld [vmem:[%s766_s2] sm:$0x7]  ;;  %v264_v60 = vshrl.u32 %v263_v55, 7  ;;  %s389_s11 = sshll.u32 %s596_s16, 8  ;;  %s186_s17 = scalar_lea.vmem [#allocation5], %s381_s30 }
  0x3a   : > { %v256_v56 = vrot.slane %v188_v43, 1  ;;  %v259_v58 = vrot.slane %v188_v43, 2  ;;  %s304_s19 = sshll.u32 %s186_s17, 4  ;;  %s720_s26 = scalar_lea.hbm %s767_s3, %s389_s11  ;;  %s722_s19 = int_to_ptr.vmem [resolvable:$true] %s304_s19 }
  0x3b   : > { %v265_v63 = vsub.s32 0, %v264_v60  ;;  %s290_s16 = scalar_lea.sflag [#allocation4], %s680_s29  ;;  %s481_s27 = scalar_lea.vmem %s722_s19, 256 }
  0x3c   : > { %p482_p6 = scmp.ne.s32.totalorder %s722_s19, %s481_s27  ;;  %p776_p11 = scmp.ne.s32.totalorder %s771_s24, 0 }
  0x3d   : > { %s554_s28 = smov [#allocation5]  }
  0x3e   : > { %p483_p12 = pnand %p482_p6, %p776_p11  ;;  %s485_s30 = sshll.u32 %s554_s28, 4  ;;  %s486_s30 = int_to_ptr.vmem [resolvable:$false] %s485_s30 }
  0x3f   : > { %s487_s5 = scalar_lea.vmem %s486_s30, 512  ;;  %p488_p7 = scmp.lt.s32.totalorder %s722_s19, %s486_s30 }
  0x40   : > { %p484_p13 = pneg %p483_p12  ;;  %p489_p10 = scmp.lt.s32.totalorder %s487_s5, %s481_s27 }
  0x42   : > { %p490_p2 = por %p489_p10, %p488_p7 }
  0x44   : > { %p491_p4 = pnand %p490_p2, %p484_p13 }
  0xb8   : > { %v194_v4 = vpop.permute.xlu0 %193 }
  0xb9   : > { %v196_v5 = vmul.f32 %v194_v4, %v696_v2  ;;  %v197_v6 = vmul.f32 %v194_v4, %v698_v3 }
  0xbb   : > { %v198_v7 = vrot.slane %v196_v5, 4  ;;  %v204_v8 = vrot.slane %v197_v6, 4 }
  0xbd   : > { %v199_v9 = vadd.f32 %v198_v7, %v196_v5  ;;  %v205_v10 = vadd.f32 %v204_v8, %v197_v6 }
  0xbf   : > { %v200_v11 = vrot.slane %v199_v9, 2  ;;  %v206_v12 = vrot.slane %v205_v10, 2 }
  0xc1   : > { %v201_v13 = vadd.f32 %v200_v11, %v199_v9  ;;  %v207_v14 = vadd.f32 %v206_v12, %v205_v10  ;;  %v553_v9 = vmov 5  }
  0xc2   : > { %441 = vset.pattern.permute.xlu1 %v553_v9  ;;  %442 = vset.pattern.permute.xlu0 %v553_v9 }
  0xc3   : > { %v202_v15 = vrot.slane %v201_v13, 1  ;;  %v208_v16 = vrot.slane %v207_v14, 1 }
  0xc5   : > { %v203_v17 = vadd.f32 %v202_v15, %v201_v13  ;;  %v209_v18 = vadd.f32 %v208_v16, %v207_v14 }
  0xc7   : > { %v210_v19 = vmax.f32 %v203_v17, %v209_v18 }
  0xc9   : > { %211 = vmax.xlane.f32.xlu0 %v210_v19 }
 0x156   : > { %v212_v20 = vpop.xlane.xlu0 %211 }
 0x157   : > { %v213_v21 = vsub.f32 %v203_v17, %v212_v20  ;;  %v214_v22 = vsub.f32 %v209_v18, %v212_v20 }
 0x159   : > { %v215_v23 = vmul.f32 1.442695, %v213_v21  ;;  %v217_v24 = vmul.f32 1.442695, %v214_v22 }
 0x15b   : > { %443 = vpow2.f32 %v215_v23 }
 0x15c   : > { %445 = vpow2.f32 %v217_v24 }
 0x165   : > { %v444_v25 = vpop.eup %443 }
 0x166   : > { %v446_v26 = vpop.eup %445 }
 0x167   : > { %v219_v27 = vadd.f32 %v446_v26, %v444_v25 }
 0x169   : > { %220 = vadd.xlane.f32.xlu1 %v219_v27 }
 0x1f6   : > { %v221_v28 = vpop.xlane.xlu1 %220 }
 0x1f7   : > { %447 = vrcp.f32 %v221_v28 }
 0x201   : > { %v448_v29 = vpop.eup %447 }
 0x202   : > { %v223_v30 = vmul.f32 %v448_v29, %v444_v25  ;;  %v224_v31 = vmul.f32 %v448_v29, %v446_v26 }
 0x204   : > { %v225_v32 = vmul.f32 %v223_v30, %v696_v2  ;;  %v226_v33 = vmul.f32 %v224_v31, %v698_v3 }
 0x206   : > { %v227_v34 = vadd.f32 %v226_v33, %v225_v32 }
 0x208   : > { %228 = vadd.xlane.f32.xlu1 %v227_v34 }
 0x295   : > { %v229_v35 = vpop.xlane.xlu1 %228 }
 0x296   : > { %v230_v36 = vmul.f32 %v229_v35, %v693_v1 }
 0x298   : > { %v232_v37 = vsel %vm231_vm0, %v230_v36, 0.0 }
 0x299   : > { %v233_v38 = vrot.slane %v232_v37, 4 }
 0x29b   : > { %v234_v39 = vadd.f32 %v233_v38, %v232_v37 }
 0x29d   : > { %v235_v40 = vrot.slane %v234_v39, 2 }
 0x29f   : > { %v236_v41 = vadd.f32 %v235_v40, %v234_v39 }
 0x2a1   : > { %v237_v42 = vrot.slane %v236_v41, 1 }
 0x2a3   : > { %v238_v44 = vadd.f32 %v237_v42, %v236_v41 }
 0x2a5   : > { %v239_v45 = vadd.f32 %v238_v44, %v188_v43 }
 0x2a7   : > { %v241_v46 = vsel %vm240_vm1, %v239_v45, 0.0 }
 0x2a8   : > { %242 = vadd.xlane.f32.xlu1 %v241_v46 }
 0x335   : > { %v243_v47 = vpop.xlane.xlu1 %242 }
 0x336   : > { %v245_v48 = vmul.f32 0.5, %v243_v47 }
 0x338   : > { %v246_v49 = vsub.f32 %v239_v45, %v245_v48 }
 0x33a   : > { %v247_v50 = vmul.f32 %v246_v49, %v246_v49 }
 0x33c   : > { %v248_v51 = vsel %vm240_vm1, %v247_v50, 0.0 }
 0x33d   : > { %249 = vadd.xlane.f32.xlu1 %v248_v51 }
 0x3ca   : > { %v250_v52 = vpop.xlane.xlu1 %249 }
 0x3cb   : > { %v251_v53 = vmul.f32 0.5, %v250_v52 }
 0x3cd   : > { %v252_v54 = vadd.f32 1e-05, %v251_v53 }
 0x3cf   : > { %449 = vrsqrt.f32 %v252_v54 }
 0x3d9   : > { %v450_v57 = vpop.eup %449 }
 0x3da   : > { %v254_v59 = vmul.f32 %v450_v57, %v246_v49 }
 0x3dc   : > { %v258_v61 = vmul.f32 %v256_v56, %v254_v59 }
 0x3de   : > { %v261_v62 = vadd.f32 %v259_v58, %v258_v61 }
 0x3e0   : > { %v262_v0 = vmax.f32 %v261_v62, 0.0 }
 0x3e2   : > { %v266_v4 = vrot.slane %v262_v0, %v265_v63 }
 0x3e4   : > { %268 = vrot.lane.b32.xlu1 %v266_v4, %s551_s9 }
 0x456   : > { %v269_v5 = vpop.permute.xlu1 %268 }
 0x457   : > { %v271_v6 = vmul.f32 %v269_v5, %v693_v1 }
 0x459   : > { %273 = vrot.lane.b32.xlu1 %v271_v6, %s552_s10 }
 0x4cb   : > { %v274_v7 = vpop.permute.xlu1 %273 }
 0x4cc   : > { %v276_v8 = vsel %vm231_vm0, %v274_v7, 0.0 }
 0x4cd   : > { %277 = vadd.xlane.f32.xlu0 %v276_v8 }
 0x55a   : > { %v278_v10 = vpop.xlane.xlu0 %277 }
 0x55b   : > { %v279_v11 = vadd.f32 %v278_v10, %v693_v1 }
 0x55d   : > { %282 = vperm.xlu1 %441, %v279_v11  }
 0x5dc   : > { %v283_v12 = vpop.permute.xlu1 %282 }
 0x5dd   : > { %v285_v13 = vadd.f32 %v283_v12, %v696_v2  ;;  %v286_v14 = vadd.f32 %v283_v12, %v698_v3 }
 0x5df   : > { %287 = vst [vmem:[%s186_s17] sm:$0xff] %v285_v13  ;;  %288 = vst [vmem:[%s186_s17 + $0x8] sm:$0xff] %v286_v14 }
 0x5e0   : > { %494 = shalt.err (!%p491_p4)
}
 0x5e1   : > { %s495_s29 = scalar_lea.hbm %s720_s26, 256  ;;  %s499_s6 = scalar_lea.hbm %s767_s3, 512 }
 0x5e2   : > { %p496_p5 = scmp.ne.s32.totalorder %s720_s26, %s495_s29  ;;  %p500_p0 = scmp.lt.u32.totalorder %s720_s26, %s767_s3 }
 0x5e3   : > { %p501_p1 = scmp.lt.u32.totalorder %s499_s6, %s495_s29  ;;  %p503_p6 = scmp.lt.u32.totalorder %s495_s29, %s720_s26 }
 0x5e4   : > { %p497_p8 = pnand %p496_p5, %p776_p11 }
 0x5e5   : > { %p502_p3 = por %p501_p1, %p500_p0 }
 0x5e6   : > { %p498_p9 = pneg %p497_p8 }
 0x5e7   : > { %p504_p12 = por %p503_p6, %p502_p3 }
 0x5e9   : > { %p505_p13 = pnand %p504_p12, %p498_p9 }
 0x5eb   : > { %508 = shalt.err (!%p505_p13)
}
 0x5ec   : > { %392 = dma.vmem_to_hbm [thread:$0]  (%p776_p11), %s722_s19, 256, %s720_s26, %s290_s16  }
 0x5ed PF: > { %s316_s9 = sand.u32 1, %s535_s12   ;;  %p777_p7 = scmp.ne.s32.totalorder %s772_s25, 0 }
 0x5ee   : > { %p778_p10 = scmp.ge.s32.totalorder %s547_s15, 2  ;;  %s317_s10 = scalar_lea.sflag [#allocation4], %s316_s9 }
 0x5f0   : > { %p399_p2 = pnand %p778_p10, %p777_p7 }
 0x5f2   : > { %530 = dma.done.wait (!%p399_p2), %s317_s10, 256  }
 0x5f3   : > { %532 = vsyncadd (!%p399_p2), %s317_s10, 4294967040  ;;  %p16_p4 = scmp.ge.s32.totalorder %s600_s18, 4   ;;  %s779_s12 = smov %s539_s13 }
 0x5f4   : > { %s780_s13 = smov %s543_s14  ;;  %s781_s14 = smov %s612_s21 }
 0x5f5   : > { %s782_s15 = smov %s600_s18  ;;  %18 = sbr.rel (!%p16_p4) target bundleno = 5 (0x5), region = 77 }
 0x5fc   :  { %322 = vsyncpa [#allocation3], 1 }
 0x5fd   :  { %324 = vsyncpa [#allocation3 + $0x1], 1 }
 0x5fe   :  { %325 = vsyncpa [#allocation4], 1 }
 0x5ff   :  { %327 = vsyncpa [#allocation4 + $0x1], 1 }

</bundles_post_ra>
